<compile_context>
chip_gen: v5e
topology: v5e:2x2
jax: 0.10.0
libtpu: 0.0.40
codegen_flags: <defaults>
</compile_context>

<pallas_src>
import math
import functools

import jax
import jax.numpy as jnp
from jax.experimental import pallas as pl
from jax.experimental.pallas import tpu as pltpu

SQRT_2_OVER_PI = math.sqrt(2.0 / math.pi)
GELU_COEF = 0.04475  # exact constant from the reference module (not 0.044715)


def _mlp_kernel(x_ref, w1_ref, b1_ref, w2_ref, b2_ref, o_ref, acc_ref):
    # x_ref:  (tm, H)                    token tile (native dtype)
    # w1_ref: (H, tI), b1_ref: (1, tI)   I-tile of dense_1
    # w2_ref: (tI, H), b2_ref: (1, H)    I-tile of dense_2
    # acc_ref: (tm, H) f32 accumulator, resident across the I (reduction) axis
    k = pl.program_id(1)

    @pl.when(k == 0)
    def _():
        acc_ref[...] = jnp.zeros_like(acc_ref)

    # dense_1 for this I-tile: MXU in native dtype, f32 accumulate.
    h = jnp.dot(x_ref[...], w1_ref[...], preferred_element_type=jnp.float32)
    h = h + b1_ref[...].astype(jnp.float32)

    # NewGELUActivation: 0.5*x*(1 + tanh(sqrt(2/pi)*(x + 0.04475*x^3)))
    g = 0.5 * h * (1.0 + jnp.tanh(SQRT_2_OVER_PI * (h + GELU_COEF * h * h * h)))

    # dense_2 partial sum for this I-tile.
    acc_ref[...] += jnp.dot(g.astype(w2_ref.dtype), w2_ref[...],
                            preferred_element_type=jnp.float32)

    @pl.when(k == pl.num_programs(1) - 1)
    def _():
        # Bias + cast once per token tile; dropout (eval mode) = identity.
        o_ref[...] = (acc_ref[...] + b2_ref[...].astype(jnp.float32)).astype(o_ref.dtype)


def _round_up(v, m):
    return ((v + m - 1) // m) * m


@functools.partial(jax.jit, static_argnames=("tm", "ti"))
def mlp_forward(x, w1, b1, w2, b2, *, tm=256, ti=512):
    """x: [B, S, H]; w1: [H, I]; b1: [I]; w2: [I, H]; b2: [H] -> [B, S, H]."""
    B, S, H = x.shape
    I = w1.shape[1]
    N = B * S

    # Token tiling: shrink the tile for tiny inputs, pad N to a tile multiple.
    tm_eff = min(tm, _round_up(N, 16))        # sublane-aligned (f32 & bf16 safe)
    n_pad = _round_up(N, tm_eff)

    # Intermediate tiling: lane-aligned (multiple of 128), pad I if needed.
    ti_eff = min(ti, _round_up(I, 128))
    i_pad = _round_up(I, ti_eff)

    x2 = x.reshape(N, H)
    if n_pad != N:
        x2 = jnp.pad(x2, ((0, n_pad - N), (0, 0)))

    w1p, b1p, w2p = w1, b1, w2
    if i_pad != I:
        # Zero-padding I is exact: gelu(0) = 0 and the padded W2 rows are zero.
        w1p = jnp.pad(w1, ((0, 0), (0, i_pad - I)))
        b1p = jnp.pad(b1, ((0, i_pad - I),))
        w2p = jnp.pad(w2, ((0, i_pad - I), (0, 0)))

    b1_2 = b1p.reshape(1, i_pad)
    b2_2 = b2.reshape(1, H)

    grid = (n_pad // tm_eff, i_pad // ti_eff)

    itemsize = x.dtype.itemsize
    cost = pl.CostEstimate(
        flops=int(4 * n_pad * H * i_pad),          # two matmuls, 2*M*N*K each
        transcendentals=int(n_pad * i_pad),        # one tanh per hidden element
        bytes_accessed=int(
            (x2.size
             + grid[0] * (w1p.size + b1_2.size + w2p.size + b2_2.size)
             + n_pad * H) * itemsize),
    )

    out = pl.pallas_call(
        _mlp_kernel,
        out_shape=jax.ShapeDtypeStruct((n_pad, H), x.dtype),
        grid_spec=pltpu.PrefetchScalarGridSpec(
            num_scalar_prefetch=0,
            grid=grid,
            in_specs=[
                pl.BlockSpec((tm_eff, H), lambda i, k: (i, 0)),   # x token tile
                pl.BlockSpec((H, ti_eff), lambda i, k: (0, k)),   # W1 I-tile
                pl.BlockSpec((1, ti_eff), lambda i, k: (0, k)),   # b1 I-tile
                pl.BlockSpec((ti_eff, H), lambda i, k: (k, 0)),   # W2 I-tile
                pl.BlockSpec((1, H), lambda i, k: (0, 0)),        # b2
            ],
            out_specs=pl.BlockSpec((tm_eff, H), lambda i, k: (i, 0)),
            scratch_shapes=[pltpu.VMEM((tm_eff, H), jnp.float32)],
        ),
        compiler_params=pltpu.CompilerParams(
            dimension_semantics=("parallel", "arbitrary"),
            vmem_limit_bytes=64 * 1024 * 1024,
        ),
        cost_estimate=cost,
    )(x2, w1p, b1_2, w2p, b2_2)

    return out[:N].reshape(B, S, H)


def init_params(key, hidden_size, intermediate_size, dtype=jnp.float32):
    """PyTorch nn.Linear-style init: U(-1/sqrt(fan_in), 1/sqrt(fan_in))."""
    k1, k2, k3, k4 = jax.random.split(key, 4)
    bound1 = 1.0 / math.sqrt(hidden_size)
    bound2 = 1.0 / math.sqrt(intermediate_size)
    # Stored as [in, out] (transpose of torch's [out, in]) so the kernel uses x @ W.
    w1 = jax.random.uniform(k1, (hidden_size, intermediate_size), dtype,
                            minval=-bound1, maxval=bound1)
    b1 = jax.random.uniform(k2, (intermediate_size,), dtype,
                            minval=-bound1, maxval=bound1)
    w2 = jax.random.uniform(k3, (intermediate_size, hidden_size), dtype,
                            minval=-bound2, maxval=bound2)
    b2 = jax.random.uniform(k4, (hidden_size,), dtype,
                            minval=-bound2, maxval=bound2)
    return w1, b1, w2, b2


def _reference(x, w1, b1, w2, b2):
    h = x @ w1 + b1
    g = 0.5 * h * (1.0 + jnp.tanh(SQRT_2_OVER_PI * (h + GELU_COEF * h ** 3)))
    return g @ w2 + b2


if __name__ == "__main__":
    # Config: hidden_size=32, intermediate_size=64, batch=2, seq=8.
    B, S, H, I = 2, 8, 32, 64

    key = jax.random.PRNGKey(0)
    kx, kp = jax.random.split(key)
    x = jax.random.normal(kx, (B, S, H), dtype=jnp.float32)
    w1, b1, w2, b2 = init_params(kp, H, I)

    y = mlp_forward(x, w1, b1, w2, b2)
    y = jax.block_until_ready(y)

    y_ref = _reference(x, w1, b1, w2, b2)
    assert y.shape == (B, S, H)
    assert jnp.allclose(y, y_ref, atol=1e-5, rtol=1e-5), "mismatch vs reference"

    print("KERNEL_OK")
</pallas_src>

<mosaic_0001>
module attributes {stable_mosaic.version = 11 : i64} {
  func.func @_mlp_kernel(%arg0: i32, %arg1: i32, %arg2: memref<16x32xf32, #tpu.memory_space<vmem>>, %arg3: memref<32x128xf32, #tpu.memory_space<vmem>>, %arg4: memref<1x128xf32, #tpu.memory_space<vmem>>, %arg5: memref<128x32xf32, #tpu.memory_space<vmem>>, %arg6: memref<1x32xf32, #tpu.memory_space<vmem>>, %arg7: memref<16x32xf32, #tpu.memory_space<vmem>>, %arg8: memref<16x32xf32, #tpu.memory_space<vmem>>) attributes {dimension_semantics = [#tpu.dimension_semantics<parallel>, #tpu.dimension_semantics<arbitrary>], iteration_bounds = array<i64: 1, 1>, scalar_prefetch = 0 : i64, scratch_operands = 1 : i64, tpu.core_type = #tpu.core_type<tc>, window_params = [{transform_indices = @transform_0, window_bounds = array<i64: 16, 32>}, {transform_indices = @transform_1, window_bounds = array<i64: 32, 128>}, {transform_indices = @transform_2, window_bounds = array<i64: 1, 128>}, {transform_indices = @transform_3, window_bounds = array<i64: 128, 32>}, {pipeline_mode = #tpu.pipeline_mode<synchronous>, transform_indices = @transform_4, window_bounds = array<i64: 1, 32>}, {transform_indices = @transform_5, window_bounds = array<i64: 16, 32>}]} {
    %c0_i32 = arith.constant 0 : i32
    %0 = arith.cmpi eq, %arg1, %c0_i32 : i32
    %1 = arith.extui %0 : i1 to i32
    %c0_i32_0 = arith.constant 0 : i32
    %2 = arith.cmpi ne, %1, %c0_i32_0 : i32
    scf.if %2 {
      %cst_19 = arith.constant 0.000000e+00 : f32
      %30 = vector.broadcast %cst_19 : f32 to vector<16x32xf32>
      %c0_20 = arith.constant 0 : index
      %c0_21 = arith.constant 0 : index
      %31 = vector.load %arg8[%c0_20, %c0_21] : memref<16x32xf32, #tpu.memory_space<vmem>>, vector<16x32xf32>
      tpu.vector_store %arg8[%c0_20, %c0_21], %30 {strides = array<i32>} : memref<16x32xf32, #tpu.memory_space<vmem>>, vector<16x32xf32>,
    } else {
    }
    %c0 = arith.constant 0 : index
    %c0_1 = arith.constant 0 : index
    %3 = vector.load %arg2[%c0, %c0_1] : memref<16x32xf32, #tpu.memory_space<vmem>>, vector<16x32xf32>
    %c0_2 = arith.constant 0 : index
    %c0_3 = arith.constant 0 : index
    %4 = vector.load %arg3[%c0_2, %c0_3] : memref<32x128xf32, #tpu.memory_space<vmem>>, vector<32x128xf32>
    %cst = arith.constant dense<0.000000e+00> : vector<16x128xf32>
    %5 = tpu.matmul %3, %4, %cst {dimension_numbers = #tpu.dot_dimension_numbers<[1], [0], [0], [1], [0, 0, 1, 1], [], []>} : vector<16x32xf32>, vector<32x128xf32>, vector<16x128xf32> -> vector<16x128xf32>
    %c0_4 = arith.constant 0 : index
    %c0_5 = arith.constant 0 : index
    %6 = vector.load %arg4[%c0_4, %c0_5] : memref<1x128xf32, #tpu.memory_space<vmem>>, vector<1x128xf32>
    %7 = vector.broadcast %6 : vector<1x128xf32> to vector<16x128xf32>
    %8 = arith.addf %5, %7 : vector<16x128xf32>
    %cst_6 = arith.constant 5.000000e-01 : f32
    %9 = vector.broadcast %cst_6 : f32 to vector<16x128xf32>
    %10 = arith.mulf %9, %8 : vector<16x128xf32>
    %cst_7 = arith.constant 4.475000e-02 : f32
    %11 = vector.broadcast %cst_7 : f32 to vector<16x128xf32>
    %12 = arith.mulf %11, %8 : vector<16x128xf32>
    %13 = arith.mulf %12, %8 : vector<16x128xf32>
    %14 = arith.mulf %13, %8 : vector<16x128xf32>
    %15 = arith.addf %8, %14 : vector<16x128xf32>
    %cst_8 = arith.constant 0.797884583 : f32
    %16 = vector.broadcast %cst_8 : f32 to vector<16x128xf32>
    %17 = arith.mulf %16, %15 : vector<16x128xf32>
    %18 = math.tanh %17 : vector<16x128xf32>
    %cst_9 = arith.constant 1.000000e+00 : f32
    %19 = vector.broadcast %cst_9 : f32 to vector<16x128xf32>
    %20 = arith.addf %19, %18 : vector<16x128xf32>
    %21 = arith.mulf %10, %20 : vector<16x128xf32>
    %c0_10 = arith.constant 0 : index
    %c0_11 = arith.constant 0 : index
    %22 = vector.load %arg8[%c0_10, %c0_11] : memref<16x32xf32, #tpu.memory_space<vmem>>, vector<16x32xf32>
    %c0_12 = arith.constant 0 : index
    %c0_13 = arith.constant 0 : index
    %23 = vector.load %arg5[%c0_12, %c0_13] : memref<128x32xf32, #tpu.memory_space<vmem>>, vector<128x32xf32>
    %cst_14 = arith.constant dense<0.000000e+00> : vector<16x32xf32>
    %24 = tpu.matmul %21, %23, %cst_14 {dimension_numbers = #tpu.dot_dimension_numbers<[1], [0], [0], [1], [0, 0, 1, 1], [], []>} : vector<16x128xf32>, vector<128x32xf32>, vector<16x32xf32> -> vector<16x32xf32>
    %25 = arith.addf %22, %24 : vector<16x32xf32>
    %c0_15 = arith.constant 0 : index
    %c0_16 = arith.constant 0 : index
    %26 = vector.load %arg8[%c0_15, %c0_16] : memref<16x32xf32, #tpu.memory_space<vmem>>, vector<16x32xf32>
    tpu.vector_store %arg8[%c0_15, %c0_16], %25 {strides = array<i32>} : memref<16x32xf32, #tpu.memory_space<vmem>>, vector<16x32xf32>,
    %c0_i32_17 = arith.constant 0 : i32
    %27 = arith.cmpi eq, %arg1, %c0_i32_17 : i32
    %28 = arith.extui %27 : i1 to i32
    %c0_i32_18 = arith.constant 0 : i32
    %29 = arith.cmpi ne, %28, %c0_i32_18 : i32
    scf.if %29 {
      %c0_19 = arith.constant 0 : index
      %c0_20 = arith.constant 0 : index
      %30 = vector.load %arg8[%c0_19, %c0_20] : memref<16x32xf32, #tpu.memory_space<vmem>>, vector<16x32xf32>
      %c0_21 = arith.constant 0 : index
      %c0_22 = arith.constant 0 : index
      %31 = vector.load %arg6[%c0_21, %c0_22] : memref<1x32xf32, #tpu.memory_space<vmem>>, vector<1x32xf32>
      %32 = vector.broadcast %31 : vector<1x32xf32> to vector<16x32xf32>
      %33 = arith.addf %30, %32 : vector<16x32xf32>
      %c0_23 = arith.constant 0 : index
      %c0_24 = arith.constant 0 : index
      %34 = vector.load %arg7[%c0_23, %c0_24] : memref<16x32xf32, #tpu.memory_space<vmem>>, vector<16x32xf32>
      tpu.vector_store %arg7[%c0_23, %c0_24], %33 {strides = array<i32>} : memref<16x32xf32, #tpu.memory_space<vmem>>, vector<16x32xf32>,
    } else {
    }
    return
  }
  func.func @transform_0(%arg0: i32, %arg1: i32) -> (i32, i32) {
    %c0_i32 = arith.constant 0 : i32
    %c0_i32_0 = arith.constant 0 : i32
    return %arg0, %c0_i32 : i32, i32
  }
  func.func @transform_1(%arg0: i32, %arg1: i32) -> (i32, i32) {
    %c0_i32 = arith.constant 0 : i32
    %c0_i32_0 = arith.constant 0 : i32
    return %c0_i32, %arg1 : i32, i32
  }
  func.func @transform_2(%arg0: i32, %arg1: i32) -> (i32, i32) {
    %c0_i32 = arith.constant 0 : i32
    %c0_i32_0 = arith.constant 0 : i32
    return %c0_i32, %arg1 : i32, i32
  }
  func.func @transform_3(%arg0: i32, %arg1: i32) -> (i32, i32) {
    %c0_i32 = arith.constant 0 : i32
    %c0_i32_0 = arith.constant 0 : i32
    return %arg1, %c0_i32 : i32, i32
  }
  func.func @transform_4(%arg0: i32, %arg1: i32) -> (i32, i32) {
    %c0_i32 = arith.constant 0 : i32
    %c0_i32_0 = arith.constant 0 : i32
    %c0_i32_1 = arith.constant 0 : i32
    return %c0_i32, %c0_i32_0 : i32, i32
  }
  func.func @transform_5(%arg0: i32, %arg1: i32) -> (i32, i32) {
    %c0_i32 = arith.constant 0 : i32
    %c0_i32_0 = arith.constant 0 : i32
    return %arg0, %c0_i32 : i32, i32
  }
}

</mosaic_0001>

<bundles_post_ra>
// kernel: mlp_forward.1
= control target key start
LH: loop header
LB: loop body
LE: loop exit
PB: predicated region body
PF: predicated region fallthrough
CT: control target
= control target key end

     0   :  { %s333_s0 = inlined_call_operand.vmem [shape: f32[16,32], index: 0, kind: input, shape index: {}]   ;;  %s334_s1 = inlined_call_operand.vmem [shape: f32[32,128], index: 1, kind: input, shape index: {}]   ;;  %s335_s2 = inlined_call_operand.vmem [shape: f32[1,128], index: 2, kind: input, shape index: {}]   ;;  %s336_s3 = inlined_call_operand.vmem [shape: f32[128,32], index: 3, kind: input, shape index: {}]   ;;  %s337_s4 = inlined_call_operand.vmem [shape: f32[1,32], index: 4, kind: input, shape index: {}]   ;;  %s338_s5 = inlined_call_operand.hbm [shape: f32[16,32], index: 5, kind: output, shape index: {}]  }
   0x1   :  { %v33_v0 = vld [vmem:[%s334_s1 + $0x18] sm:$0xff]  ;;  %v32_v1 = vld [vmem:[%s334_s1 + $0x10] sm:$0xff]  ;;  %v31_v2 = vld [vmem:[%s334_s1 + $0x8] sm:$0xff] }
   0x2   :  { %57 = vmatpush.msra.mxu0 %v33_v0  ;;  %v103_v3 = vld [vmem:[%s336_s3 + $0x78] sm:$0xff]  ;;  %v102_v4 = vld [vmem:[%s336_s3 + $0x70] sm:$0xff]  ;;  %v30_v5 = vld [vmem:[%s334_s1] sm:$0xff] }
   0x3   :  { %104 = vmatpush.msra.mxu1 %v103_v3  ;;  %v101_v6 = vld [vmem:[%s336_s3 + $0x68] sm:$0xff]  ;;  %164 = vmatpush.msra.mxu2 %v103_v3 }
   0x4   :  { %58 = vmatpush.msra.mxu0 %v32_v1 }
   0x5   :  { %10 = vsyncpa [#allocation4], 0  ;;  %vm25_vm0 = vcmask 261120   ;;  %v28_v7 = vld [vmem:[%s333_s0] sm:$0xff]  ;;  %105 = vmatpush.msra.mxu1 %v102_v4  ;;  %165 = vmatpush.msra.mxu2 %v102_v4  ;;  %v29_v9 = vld [vmem:[%s333_s0 + $0x8] sm:$0xff]  ;;  %v216_v25 = vmov 0.0  }
   0x6   :  { %59 = vmatpush.msra.mxu0 %v31_v2  ;;  %v100_v8 = vld [vmem:[%s336_s3 + $0x60] sm:$0xff]  ;;  %v99_v10 = vld [vmem:[%s336_s3 + $0x58] sm:$0xff]  ;;  %v98_v11 = vld [vmem:[%s336_s3 + $0x50] sm:$0xff]  ;;  %26 = vst.msk [vmem:[#allocation2] sm:$0xff] %vm25_vm0, %v216_v25  ;;  %s217_s11 = smov [#allocation3]   ;;  %s150_s15 = sshll.u32 %s338_s5, 4  ;;  %s151_s15 = int_to_ptr.hbm [resolvable:$true] %s150_s15 }
   0x7   :  { %106 = vmatpush.msra.mxu1 %v101_v6  ;;  %166 = vmatpush.msra.mxu2 %v101_v6  ;;  %v97_v12 = vld [vmem:[%s336_s3 + $0x48] sm:$0xff]  ;;  %v96_v13 = vld [vmem:[%s336_s3 + $0x40] sm:$0xff]  ;;  %v95_v14 = vld [vmem:[%s336_s3 + $0x38] sm:$0xff]  ;;  %27 = vst.msk [vmem:[#allocation2 + $0x8] sm:$0xff] %vm25_vm0, %v216_v25  ;;  %s148_s12 = sshll.u32 %s217_s11, 4  ;;  %s219_s16 = smov 8   ;;  %s149_s12 = int_to_ptr.vmem [resolvable:$true] %s148_s12 }
   0x8   :  { %60 = vmatpush.msra.mxu0 %v30_v5  ;;  %v94_v15 = vld [vmem:[%s336_s3 + $0x30] sm:$0xff]  ;;  %v93_v16 = vld [vmem:[%s336_s3 + $0x28] sm:$0xff]  ;;  %v92_v17 = vld [vmem:[%s336_s3 + $0x20] sm:$0xff] }
   0x9   :  { %162 = vmatmul.msk.f32.vlgmr.msra.gmra.mxu0 %vm25_vm0, %v28_v7  ;;  %107 = vmatpush.msra.mxu1 %v100_v8  ;;  %v91_v18 = vld [vmem:[%s336_s3 + $0x18] sm:$0xff]  ;;  %v90_v19 = vld [vmem:[%s336_s3 + $0x10] sm:$0xff]  ;;  %v89_v20 = vld [vmem:[%s336_s3 + $0x8] sm:$0xff] }
   0xa   :  { %167 = vmatpush.msra.mxu2 %v100_v8  ;;  %v88_v21 = vld [vmem:[%s336_s3] sm:$0xff] }
   0xb   :  { %108 = vmatpush.msra.mxu1 %v99_v10  ;;  %v184_v22 = vld [vmem:[%s335_s2] ss:$0 sm:$0xff] }
   0xc   :  { %168 = vmatpush.msra.mxu2 %v99_v10  ;;  %v185_v49 = vld [vmem:[%s337_s4] ss:$0 sm:$0xff]  ;;  %s218_s4 = smov 128  }
   0xd   :  { %109 = vmatpush.msra.mxu1 %v98_v11  ;;  %v86_v46 = vld [vmem:[#allocation2] sm:$0xff] }
   0xe   :  { %169 = vmatpush.msra.mxu2 %v98_v11  ;;  %v87_v52 = vld [vmem:[#allocation2 + $0x8] sm:$0xff] }
   0xf   :  { %110 = vmatpush.msra.mxu1 %v97_v12 }
  0x10   :  { %170 = vmatpush.msra.mxu2 %v97_v12 }
  0x11   :  { %163 = vmatmul.msk.f32.gmra.mxu0 %vm25_vm0, %v29_v9  ;;  %111 = vmatpush.msra.mxu1 %v96_v13 }
  0x12   :  { %171 = vmatpush.msra.mxu2 %v96_v13 }
  0x13   :  { %112 = vmatpush.msra.mxu1 %v95_v14 }
  0x14   :  { %172 = vmatpush.msra.mxu2 %v95_v14 }
  0x15   :  { %113 = vmatpush.msra.mxu1 %v94_v15 }
  0x16   :  { %173 = vmatpush.msra.mxu2 %v94_v15 }
  0x17   :  { %114 = vmatpush.msra.mxu1 %v93_v16 }
  0x18   :  { %174 = vmatpush.msra.mxu2 %v93_v16 }
  0x19   :  { %115 = vmatpush.msra.mxu1 %v92_v17 }
  0x1a   :  { %175 = vmatpush.msra.mxu2 %v92_v17 }
  0x1b   :  { %116 = vmatpush.msra.mxu1 %v91_v18 }
  0x1c   :  { %176 = vmatpush.msra.mxu2 %v91_v18 }
  0x1d   :  { %117 = vmatpush.msra.mxu1 %v90_v19 }
  0x1e   :  { %177 = vmatpush.msra.mxu2 %v90_v19 }
  0x1f   :  { %118 = vmatpush.msra.mxu1 %v89_v20 }
  0x20   :  { %178 = vmatpush.msra.mxu2 %v89_v20 }
  0x21   :  { %119 = vmatpush.msra.mxu1 %v88_v21 }
  0x22   :  { %179 = vmatpush.msra.mxu2 %v88_v21 }
  0x86   :  { %v62_v23 = vpop.f32.mrf.mxu0 }
  0x87   :  { %v63_v24 = vadd.f32 %v184_v22, %v62_v23 }
  0x89   :  { %v70_v26 = vmul.f32 0.04475, %v63_v24  ;;  %v68_v39 = vmul.f32 0.5, %v63_v24 }
  0x8b   :  { %v72_v27 = vmul.f32 %v70_v26, %v63_v24 }
  0x8d   :  { %v74_v28 = vmul.f32 %v72_v27, %v63_v24 }
  0x8e   :  { %v65_v29 = vpop.f32.mrf.mxu0 }
  0x8f   :  { %v66_v30 = vadd.f32 %v184_v22, %v65_v29  ;;  %v76_v31 = vadd.f32 %v74_v28, %v63_v24 }
  0x91   :  { %v78_v32 = vmul.f32 0.7978846, %v76_v31  ;;  %v71_v33 = vmul.f32 0.04475, %v66_v30  ;;  %v69_v43 = vmul.f32 0.5, %v66_v30 }
  0x93   :  { %186 = vtanh.f32 %v78_v32  ;;  %v73_v34 = vmul.f32 %v71_v33, %v66_v30 }
  0x95   :  { %v75_v35 = vmul.f32 %v73_v34, %v66_v30 }
  0x97   :  { %v77_v36 = vadd.f32 %v75_v35, %v66_v30 }
  0x99   :  { %v187_v37 = vpop.eup %186  ;;  %v79_v38 = vmul.f32 0.7978846, %v77_v36 }
  0x9a   :  { %v82_v40 = vadd.f32 1.0, %v187_v37 }
  0x9b   :  { %188 = vtanh.f32 %v79_v38 }
  0x9c   :  { %v84_v41 = vmul.f32 %v82_v40, %v68_v39 }
  0x9e   :  { %120 = vmatmul.f32.vlgmr.msra.gmra.mxu1 %v84_v41 }
  0xa1   :  { %v189_v42 = vpop.eup %188 }
  0xa2   :  { %v83_v44 = vadd.f32 1.0, %v189_v42 }
  0xa4   :  { %v85_v45 = vmul.f32 %v83_v44, %v69_v43 }
  0xa6   :  { %123 = vmatmul.f32.vlgmr.msra.gmra.mxu2 %v85_v45 }
 0x11b   :  { %v121_v47 = vpop.f32.mrf.mxu1 }
 0x11c   :  { %v127_v48 = vadd.f32 %v121_v47, %v86_v46 }
 0x11e   :  { %129 = vst.msk [vmem:[#allocation2] sm:$0xff] %vm25_vm0, %v127_v48 }
 0x125   :  { %v134_v50 = vld [vmem:[#allocation2] sm:$0xff] }
 0x126   :  { %v140_v51 = vadd.f32 %v185_v49, %v134_v50 }
 0x128   :  { %142 = vst.msk [vmem:[#allocation3] sm:$0xff] %vm25_vm0, %v140_v51 }
 0x129   :  { %v124_v53 = vpop.f32.mrf.mxu2 }
 0x12a   :  { %v128_v54 = vadd.f32 %v124_v53, %v87_v52 }
 0x12c   :  { %130 = vst.msk [vmem:[#allocation2 + $0x8] sm:$0xff] %vm25_vm0, %v128_v54 }
 0x133   :  { %v135_v55 = vld [vmem:[#allocation2 + $0x8] sm:$0xff] }
 0x134   :  { %v141_v56 = vadd.f32 %v185_v49, %v135_v55 }
 0x136   :  { %143 = vst.msk [vmem:[#allocation3 + $0x8] sm:$0xff] %vm25_vm0, %v141_v56 }
 0x137   :  { %156 = dma.vmem_to_hbm [thread:$0]  %s149_s12, 256, %s151_s15, [#allocation4], %s218_s4, %s218_s4, %s219_s16  }
 0x138   :  { %214 = dma.done.wait [#allocation4], 256  }
 0x139   :  { %215 = vsyncadd [#allocation4], 4294967040 }
 0x13a   :  { %161 = vsyncpa [#allocation4], 1 }

</bundles_post_ra>
